<compile_context>
chip_gen: v7x
topology: tpu7x:2x2x1
jax: 0.10.0
libtpu: 0.0.40
codegen_flags: <defaults>
</compile_context>

<pallas_src>
import functools

import jax
import jax.numpy as jnp
from jax.experimental import pallas as pl
from jax.experimental.pallas import tpu as pltpu

_SQRT_2_OVER_PI = 0.7978845608028654  # sqrt(2/pi)


def _round_up(x, m):
    return (x + m - 1) // m * m


def _ffn_kernel(x_ref, w1_ref, b1_ref, w2_ref, b2_ref, o_ref):
    # x_ref : (tm, E)   tile of flattened tokens (native dtype)
    # w1_ref: (E, H)    first linear weight (native dtype, grid-invariant)
    # b1_ref: (1, H)    first linear bias (f32)
    # w2_ref: (H, E)    second linear weight (native dtype, grid-invariant)
    # b2_ref: (1, E)    second linear bias (f32)
    # Linear 1: MXU matmul in native dtype, f32 accumulation, bias in f32.
    h = jnp.dot(x_ref[...], w1_ref[...], preferred_element_type=jnp.float32)
    h = h + b1_ref[...]

    # GELU, tanh approximation (matches the PyTorch GELU module exactly).
    c = jnp.float32(_SQRT_2_OVER_PI)
    h = 0.5 * h * (1.0 + jnp.tanh(c * (h + 0.044715 * (h * h * h))))

    # Linear 2: cast hidden back to the weight dtype for the MXU, f32 accum.
    o = jnp.dot(h.astype(w2_ref.dtype), w2_ref[...],
                preferred_element_type=jnp.float32)
    o = o + b2_ref[...]
    o_ref[...] = o.astype(o_ref.dtype)


@functools.partial(jax.jit, static_argnames=("tm", "single_buffer_weights"))
def _feed_forward_impl(x, w1, b1, w2, b2, *, tm, single_buffer_weights):
    B, S, E = x.shape
    H = w1.shape[1]
    M = B * S

    # Sublane granularity: 8 rows for 32-bit activations, 16 for 16-bit.
    sub = 8 if x.dtype.itemsize >= 4 else 16
    tm_eff = _round_up(min(tm, _round_up(M, sub)), sub)
    M_p = _round_up(M, tm_eff)

    # Lane-dense padding: keep the last dims multiples of 128.
    E_p = _round_up(E, 128)
    H_p = _round_up(H, 128)

    x2d = x.reshape(M, E)
    if (M_p, E_p) != (M, E):
        x2d = jnp.pad(x2d, ((0, M_p - M), (0, E_p - E)))
    w1p = jnp.pad(w1, ((0, E_p - E), (0, H_p - H))) if (E_p, H_p) != (E, H) else w1
    w2p = jnp.pad(w2, ((0, H_p - H), (0, E_p - E))) if (H_p, E_p) != (H, E) else w2
    b1p = jnp.pad(b1, (0, H_p - H)).astype(jnp.float32).reshape(1, H_p)
    b2p = jnp.pad(b2, (0, E_p - E)).astype(jnp.float32).reshape(1, E_p)

    grid = (M_p // tm_eff,)

    # Weights/biases are grid-invariant -> single-buffer them; the x tile and
    # the output keep default double-buffering so DMA overlaps compute.
    w_mode = pl.Buffered(buffer_count=1) if single_buffer_weights else None

    def const_spec(shape):
        return pl.BlockSpec(shape, lambda i: (0, 0), pipeline_mode=w_mode)

    in_specs = [
        pl.BlockSpec((tm_eff, E_p), lambda i: (i, 0)),   # x tile
        const_spec((E_p, H_p)),                          # W1 (full, resident)
        const_spec((1, H_p)),                            # b1
        const_spec((H_p, E_p)),                          # W2 (full, resident)
        const_spec((1, E_p)),                            # b2
    ]
    out_specs = pl.BlockSpec((tm_eff, E_p), lambda i: (i, 0))

    itemsize = x.dtype.itemsize
    w_itemsize = w1.dtype.itemsize
    cost = pl.CostEstimate(
        flops=4 * M_p * E_p * H_p,                     # two matmuls
        transcendentals=M_p * H_p,                     # tanh per hidden elem
        bytes_accessed=(2 * M_p * E_p * itemsize       # x in + out
                        + 2 * E_p * H_p * w_itemsize   # W1 + W2
                        + (H_p + E_p) * 4),            # biases (f32)
    )

    # VMEM working set: double-buffered x/out tiles, (single-buffered) weights,
    # f32 biases and the f32 hidden tile.  1.5x headroom, capped well inside
    # the v7x 64 MiB physical VMEM for the tilings used here.
    w_bufs = 1 if single_buffer_weights else 2
    vmem_bytes = (4 * tm_eff * E_p * itemsize
                  + w_bufs * 2 * E_p * H_p * w_itemsize
                  + (H_p + E_p) * 4
                  + tm_eff * H_p * 4)
    vmem_limit = min(max(int(vmem_bytes * 1.5), 32 * 1024 * 1024),
                     96 * 1024 * 1024)

    out2d = pl.pallas_call(
        _ffn_kernel,
        out_shape=jax.ShapeDtypeStruct((M_p, E_p), x.dtype),
        grid_spec=pltpu.PrefetchScalarGridSpec(
            num_scalar_prefetch=0,
            grid=grid,
            in_specs=in_specs,
            out_specs=out_specs,
        ),
        compiler_params=pltpu.CompilerParams(
            dimension_semantics=("parallel",),
            vmem_limit_bytes=vmem_limit),
        cost_estimate=cost,
    )(x2d, w1p, b1p, w2p, b2p)

    return out2d[:M, :E].reshape(B, S, E)


def feed_forward(x, w1, b1, w2, b2, *, tm=256):
    """x: (B, S, E) -> (B, S, E). Fused Linear -> tanh-GELU -> Linear."""
    try:
        return _feed_forward_impl(x, w1, b1, w2, b2, tm=tm,
                                  single_buffer_weights=True)
    except Exception:
        # Fallback for toolchains that reject Buffered(1) pipeline mode:
        # identical math, default (double) buffering for the weights.
        return _feed_forward_impl(x, w1, b1, w2, b2, tm=tm,
                                  single_buffer_weights=False)


def _gelu_ref(x):
    c = jnp.sqrt(jnp.float32(2.0 / jnp.pi))
    return 0.5 * x * (1.0 + jnp.tanh(c * (x + 0.044715 * x ** 3)))


def _ffn_ref(x, w1, b1, w2, b2):
    h = _gelu_ref(x @ w1 + b1)
    return h @ w2 + b2


if __name__ == "__main__":
    # Config: emb_dim=32 -> hidden=4*32=128 (matches FeedForward({'emb_dim':32}))
    batch, seq, emb_dim = 2, 8, 32
    hidden = 4 * emb_dim

    key = jax.random.PRNGKey(0)
    kx, kw1, kb1, kw2, kb2 = jax.random.split(key, 5)

    x = jax.random.normal(kx, (batch, seq, emb_dim), dtype=jnp.float32)
    # Weights stored (in_features, out_features): kernel computes x @ W + b,
    # equivalent to PyTorch's x @ weight.T + bias.
    w1 = jax.random.normal(kw1, (emb_dim, hidden), dtype=jnp.float32) * 0.02
    b1 = jax.random.normal(kb1, (hidden,), dtype=jnp.float32) * 0.02
    w2 = jax.random.normal(kw2, (hidden, emb_dim), dtype=jnp.float32) * 0.02
    b2 = jax.random.normal(kb2, (emb_dim,), dtype=jnp.float32) * 0.02

    out = feed_forward(x, w1, b1, w2, b2)
    out = jax.block_until_ready(out)

    ref = _ffn_ref(x, w1, b1, w2, b2)
    assert out.shape == (batch, seq, emb_dim)
    assert jnp.allclose(out, ref, atol=1e-5, rtol=1e-5), "mismatch vs reference"

    print("KERNEL_OK")
</pallas_src>

<mosaic_0001>
module attributes {stable_mosaic.version = 11 : i64} {
  func.func @_ffn_kernel(%arg0: i32, %arg1: memref<16x128xf32, #tpu.memory_space<vmem>>, %arg2: memref<128x128xf32, #tpu.memory_space<vmem>>, %arg3: memref<1x128xf32, #tpu.memory_space<vmem>>, %arg4: memref<128x128xf32, #tpu.memory_space<vmem>>, %arg5: memref<1x128xf32, #tpu.memory_space<vmem>>, %arg6: memref<16x128xf32, #tpu.memory_space<vmem>>) attributes {dimension_semantics = [#tpu.dimension_semantics<parallel>], iteration_bounds = array<i64: 1>, scalar_prefetch = 0 : i64, scratch_operands = 0 : i64, tpu.core_type = #tpu.core_type<tc>, window_params = [{transform_indices = @transform_0, window_bounds = array<i64: 16, 128>}, {pipeline_mode = #tpu.pipeline_mode<synchronous>, transform_indices = @transform_1, window_bounds = array<i64: 128, 128>}, {pipeline_mode = #tpu.pipeline_mode<synchronous>, transform_indices = @transform_2, window_bounds = array<i64: 1, 128>}, {pipeline_mode = #tpu.pipeline_mode<synchronous>, transform_indices = @transform_3, window_bounds = array<i64: 128, 128>}, {pipeline_mode = #tpu.pipeline_mode<synchronous>, transform_indices = @transform_4, window_bounds = array<i64: 1, 128>}, {transform_indices = @transform_5, window_bounds = array<i64: 16, 128>}]} {
    %c0 = arith.constant 0 : index
    %c0_0 = arith.constant 0 : index
    %0 = vector.load %arg1[%c0, %c0_0] : memref<16x128xf32, #tpu.memory_space<vmem>>, vector<16x128xf32>
    %c0_1 = arith.constant 0 : index
    %c0_2 = arith.constant 0 : index
    %1 = vector.load %arg2[%c0_1, %c0_2] : memref<128x128xf32, #tpu.memory_space<vmem>>, vector<128x128xf32>
    %cst = arith.constant dense<0.000000e+00> : vector<16x128xf32>
    %2 = tpu.matmul %0, %1, %cst {dimension_numbers = #tpu.dot_dimension_numbers<[1], [0], [0], [1], [0, 0, 1, 1], [], []>} : vector<16x128xf32>, vector<128x128xf32>, vector<16x128xf32> -> vector<16x128xf32>
    %c0_3 = arith.constant 0 : index
    %c0_4 = arith.constant 0 : index
    %3 = vector.load %arg3[%c0_3, %c0_4] : memref<1x128xf32, #tpu.memory_space<vmem>>, vector<1x128xf32>
    %4 = vector.broadcast %3 : vector<1x128xf32> to vector<16x128xf32>
    %5 = arith.addf %2, %4 : vector<16x128xf32>
    %cst_5 = arith.constant 5.000000e-01 : f32
    %6 = vector.broadcast %cst_5 : f32 to vector<16x128xf32>
    %7 = arith.mulf %6, %5 : vector<16x128xf32>
    %8 = arith.mulf %5, %5 : vector<16x128xf32>
    %9 = arith.mulf %8, %5 : vector<16x128xf32>
    %cst_6 = arith.constant 4.471500e-02 : f32
    %10 = vector.broadcast %cst_6 : f32 to vector<16x128xf32>
    %11 = arith.mulf %10, %9 : vector<16x128xf32>
    %12 = arith.addf %5, %11 : vector<16x128xf32>
    %cst_7 = arith.constant 0.797884583 : f32
    %13 = vector.broadcast %cst_7 : f32 to vector<16x128xf32>
    %14 = arith.mulf %13, %12 : vector<16x128xf32>
    %15 = math.tanh %14 : vector<16x128xf32>
    %cst_8 = arith.constant 1.000000e+00 : f32
    %16 = vector.broadcast %cst_8 : f32 to vector<16x128xf32>
    %17 = arith.addf %16, %15 : vector<16x128xf32>
    %18 = arith.mulf %7, %17 : vector<16x128xf32>
    %c0_9 = arith.constant 0 : index
    %c0_10 = arith.constant 0 : index
    %19 = vector.load %arg4[%c0_9, %c0_10] : memref<128x128xf32, #tpu.memory_space<vmem>>, vector<128x128xf32>
    %cst_11 = arith.constant dense<0.000000e+00> : vector<16x128xf32>
    %20 = tpu.matmul %18, %19, %cst_11 {dimension_numbers = #tpu.dot_dimension_numbers<[1], [0], [0], [1], [0, 0, 1, 1], [], []>} : vector<16x128xf32>, vector<128x128xf32>, vector<16x128xf32> -> vector<16x128xf32>
    %c0_12 = arith.constant 0 : index
    %c0_13 = arith.constant 0 : index
    %21 = vector.load %arg5[%c0_12, %c0_13] : memref<1x128xf32, #tpu.memory_space<vmem>>, vector<1x128xf32>
    %22 = vector.broadcast %21 : vector<1x128xf32> to vector<16x128xf32>
    %23 = arith.addf %20, %22 : vector<16x128xf32>
    %c0_14 = arith.constant 0 : index
    %c0_15 = arith.constant 0 : index
    %24 = vector.load %arg6[%c0_14, %c0_15] : memref<16x128xf32, #tpu.memory_space<vmem>>, vector<16x128xf32>
    tpu.vector_store %arg6[%c0_14, %c0_15], %23 {strides = array<i32>} : memref<16x128xf32, #tpu.memory_space<vmem>>, vector<16x128xf32>,
    return
  }
  func.func @transform_0(%arg0: i32) -> (i32, i32) {
    %c0_i32 = arith.constant 0 : i32
    %c0_i32_0 = arith.constant 0 : i32
    return %arg0, %c0_i32 : i32, i32
  }
  func.func @transform_1(%arg0: i32) -> (i32, i32) {
    %c0_i32 = arith.constant 0 : i32
    %c0_i32_0 = arith.constant 0 : i32
    %c0_i32_1 = arith.constant 0 : i32
    return %c0_i32, %c0_i32_0 : i32, i32
  }
  func.func @transform_2(%arg0: i32) -> (i32, i32) {
    %c0_i32 = arith.constant 0 : i32
    %c0_i32_0 = arith.constant 0 : i32
    %c0_i32_1 = arith.constant 0 : i32
    return %c0_i32, %c0_i32_0 : i32, i32
  }
  func.func @transform_3(%arg0: i32) -> (i32, i32) {
    %c0_i32 = arith.constant 0 : i32
    %c0_i32_0 = arith.constant 0 : i32
    %c0_i32_1 = arith.constant 0 : i32
    return %c0_i32, %c0_i32_0 : i32, i32
  }
  func.func @transform_4(%arg0: i32) -> (i32, i32) {
    %c0_i32 = arith.constant 0 : i32
    %c0_i32_0 = arith.constant 0 : i32
    %c0_i32_1 = arith.constant 0 : i32
    return %c0_i32, %c0_i32_0 : i32, i32
  }
  func.func @transform_5(%arg0: i32) -> (i32, i32) {
    %c0_i32 = arith.constant 0 : i32
    %c0_i32_0 = arith.constant 0 : i32
    return %arg0, %c0_i32 : i32, i32
  }
}

module attributes {stable_mosaic.version = 11 : i64} {
  func.func @_ffn_kernel(%arg0: i32, %arg1: memref<16x128xf32, #tpu.memory_space<vmem>>, %arg2: memref<128x128xf32, #tpu.memory_space<vmem>>, %arg3: memref<1x128xf32, #tpu.memory_space<vmem>>, %arg4: memref<128x128xf32, #tpu.memory_space<vmem>>, %arg5: memref<1x128xf32, #tpu.memory_space<vmem>>, %arg6: memref<16x128xf32, #tpu.memory_space<vmem>>) attributes {dimension_semantics = [#tpu.dimension_semantics<parallel>], iteration_bounds = array<i64: 1>, scalar_prefetch = 0 : i64, scratch_operands = 0 : i64, tpu.core_type = #tpu.core_type<tc>, window_params = [{transform_indices = @transform_0, window_bounds = array<i64: 16, 128>}, {pipeline_mode = #tpu.pipeline_mode<synchronous>, transform_indices = @transform_1, window_bounds = array<i64: 128, 128>}, {pipeline_mode = #tpu.pipeline_mode<synchronous>, transform_indices = @transform_2, window_bounds = array<i64: 1, 128>}, {pipeline_mode = #tpu.pipeline_mode<synchronous>, transform_indices = @transform_3, window_bounds = array<i64: 128, 128>}, {pipeline_mode = #tpu.pipeline_mode<synchronous>, transform_indices = @transform_4, window_bounds = array<i64: 1, 128>}, {transform_indices = @transform_5, window_bounds = array<i64: 16, 128>}]} {
    %c0 = arith.constant 0 : index
    %c0_0 = arith.constant 0 : index
    %0 = vector.load %arg1[%c0, %c0_0] : memref<16x128xf32, #tpu.memory_space<vmem>>, vector<16x128xf32>
    %c0_1 = arith.constant 0 : index
    %c0_2 = arith.constant 0 : index
    %1 = vector.load %arg2[%c0_1, %c0_2] : memref<128x128xf32, #tpu.memory_space<vmem>>, vector<128x128xf32>
    %cst = arith.constant dense<0.000000e+00> : vector<16x128xf32>
    %2 = tpu.matmul %0, %1, %cst {dimension_numbers = #tpu.dot_dimension_numbers<[1], [0], [0], [1], [0, 0, 1, 1], [], []>} : vector<16x128xf32>, vector<128x128xf32>, vector<16x128xf32> -> vector<16x128xf32>
    %c0_3 = arith.constant 0 : index
    %c0_4 = arith.constant 0 : index
    %3 = vector.load %arg3[%c0_3, %c0_4] : memref<1x128xf32, #tpu.memory_space<vmem>>, vector<1x128xf32>
    %4 = vector.broadcast %3 : vector<1x128xf32> to vector<16x128xf32>
    %5 = arith.addf %2, %4 : vector<16x128xf32>
    %cst_5 = arith.constant 5.000000e-01 : f32
    %6 = vector.broadcast %cst_5 : f32 to vector<16x128xf32>
    %7 = arith.mulf %6, %5 : vector<16x128xf32>
    %8 = arith.mulf %5, %5 : vector<16x128xf32>
    %9 = arith.mulf %8, %5 : vector<16x128xf32>
    %cst_6 = arith.constant 4.471500e-02 : f32
    %10 = vector.broadcast %cst_6 : f32 to vector<16x128xf32>
    %11 = arith.mulf %10, %9 : vector<16x128xf32>
    %12 = arith.addf %5, %11 : vector<16x128xf32>
    %cst_7 = arith.constant 0.797884583 : f32
    %13 = vector.broadcast %cst_7 : f32 to vector<16x128xf32>
    %14 = arith.mulf %13, %12 : vector<16x128xf32>
    %15 = math.tanh %14 : vector<16x128xf32>
    %cst_8 = arith.constant 1.000000e+00 : f32
    %16 = vector.broadcast %cst_8 : f32 to vector<16x128xf32>
    %17 = arith.addf %16, %15 : vector<16x128xf32>
    %18 = arith.mulf %7, %17 : vector<16x128xf32>
    %c0_9 = arith.constant 0 : index
    %c0_10 = arith.constant 0 : index
    %19 = vector.load %arg4[%c0_9, %c0_10] : memref<128x128xf32, #tpu.memory_space<vmem>>, vector<128x128xf32>
    %cst_11 = arith.constant dense<0.000000e+00> : vector<16x128xf32>
    %20 = tpu.matmul %18, %19, %cst_11 {dimension_numbers = #tpu.dot_dimension_numbers<[1], [0], [0], [1], [0, 0, 1, 1], [], []>} : vector<16x128xf32>, vector<128x128xf32>, vector<16x128xf32> -> vector<16x128xf32>
    %c0_12 = arith.constant 0 : index
    %c0_13 = arith.constant 0 : index
    %21 = vector.load %arg5[%c0_12, %c0_13] : memref<1x128xf32, #tpu.memory_space<vmem>>, vector<1x128xf32>
    %22 = vector.broadcast %21 : vector<1x128xf32> to vector<16x128xf32>
    %23 = arith.addf %20, %22 : vector<16x128xf32>
    %c0_14 = arith.constant 0 : index
    %c0_15 = arith.constant 0 : index
    %24 = vector.load %arg6[%c0_14, %c0_15] : memref<16x128xf32, #tpu.memory_space<vmem>>, vector<16x128xf32>
    tpu.vector_store %arg6[%c0_14, %c0_15], %23 {strides = array<i32>} : memref<16x128xf32, #tpu.memory_space<vmem>>, vector<16x128xf32>,
    return
  }
  func.func @transform_0(%arg0: i32) -> (i32, i32) {
    %c0_i32 = arith.constant 0 : i32
    %c0_i32_0 = arith.constant 0 : i32
    return %arg0, %c0_i32 : i32, i32
  }
  func.func @transform_1(%arg0: i32) -> (i32, i32) {
    %c0_i32 = arith.constant 0 : i32
    %c0_i32_0 = arith.constant 0 : i32
    %c0_i32_1 = arith.constant 0 : i32
    return %c0_i32, %c0_i32_0 : i32, i32
  }
  func.func @transform_2(%arg0: i32) -> (i32, i32) {
    %c0_i32 = arith.constant 0 : i32
    %c0_i32_0 = arith.constant 0 : i32
    %c0_i32_1 = arith.constant 0 : i32
    return %c0_i32, %c0_i32_0 : i32, i32
  }
  func.func @transform_3(%arg0: i32) -> (i32, i32) {
    %c0_i32 = arith.constant 0 : i32
    %c0_i32_0 = arith.constant 0 : i32
    %c0_i32_1 = arith.constant 0 : i32
    return %c0_i32, %c0_i32_0 : i32, i32
  }
  func.func @transform_4(%arg0: i32) -> (i32, i32) {
    %c0_i32 = arith.constant 0 : i32
    %c0_i32_0 = arith.constant 0 : i32
    %c0_i32_1 = arith.constant 0 : i32
    return %c0_i32, %c0_i32_0 : i32, i32
  }
  func.func @transform_5(%arg0: i32) -> (i32, i32) {
    %c0_i32 = arith.constant 0 : i32
    %c0_i32_0 = arith.constant 0 : i32
    return %arg0, %c0_i32 : i32, i32
  }
}

</mosaic_0001>

<bundles_post_ra>
// kernel: _feed_forward_impl.1
= control target key start
LH: loop header
LB: loop body
LE: loop exit
PB: predicated region body
PF: predicated region fallthrough
CT: control target
= control target key end

     0   :  { %s562_s1 = inlined_call_operand.vmem [shape: f32[128,128], index: 1, kind: input, shape index: {}]   ;;  %s563_s0 = inlined_call_operand.vmem [shape: f32[16,128], index: 0, kind: input, shape index: {}]   ;;  %s564_s3 = inlined_call_operand.vmem [shape: f32[128,128], index: 3, kind: input, shape index: {}]   ;;  %s565_s2 = inlined_call_operand.vmem [shape: f32[1,128], index: 2, kind: input, shape index: {}]   ;;  %s566_s4 = inlined_call_operand.vmem [shape: f32[1,128], index: 4, kind: input, shape index: {}]   ;;  %s567_s5 = inlined_call_operand.vmem [shape: f32[16,128], index: 5, kind: output, shape index: {}]  }
   0x1   :  { %v22_v0 = vld [vmem:[%s562_s1] sm:$0xff]  ;;  %v23_v1 = vld [vmem:[%s562_s1 + $0x8] sm:$0xff]  ;;  %v24_v2 = vld [vmem:[%s562_s1 + $0x10] sm:$0xff] }
   0x2   :  { %v350_v3 = vpack.c.bf16 %v23_v1, %v22_v0  ;;  %v25_v4 = vld [vmem:[%s562_s1 + $0x18] sm:$0xff]  ;;  %v26_v6 = vld [vmem:[%s562_s1 + $0x20] sm:$0xff]  ;;  %v27_v7 = vld [vmem:[%s562_s1 + $0x28] sm:$0xff] }
   0x3   :  { %v354_v5 = vpack.c.bf16 %v25_v4, %v24_v2  ;;  %v358_v8 = vpack.c.bf16 %v27_v7, %v26_v6  ;;  %v28_v9 = vld [vmem:[%s562_s1 + $0x30] sm:$0xff]  ;;  %v20_v10 = vld [vmem:[%s563_s0] sm:$0xff]  ;;  %v29_v11 = vld [vmem:[%s562_s1 + $0x38] sm:$0xff] }
   0x4   :  { %351 = vmatprep.subr.bf16.mxu0 %v350_v3  ;;  %312 = vmatprep.mubr.f32.mxu0 %v20_v10  ;;  %v138_v12 = vld [vmem:[%s564_s3] sm:$0xff]  ;;  %v139_v13 = vld [vmem:[%s564_s3 + $0x8] sm:$0xff]  ;;  %v362_v15 = vpack.c.bf16 %v29_v11, %v28_v9  ;;  %v32_v19 = vld [vmem:[%s562_s1 + $0x50] sm:$0xff] }
   0x5   :  { %353 = vmatpush3.bf16.msra.mxu0 %v350_v3  ;;  %v382_v14 = vpack.c.bf16 %v139_v13, %v138_v12  ;;  %v30_v16 = vld [vmem:[%s562_s1 + $0x40] sm:$0xff]  ;;  %v31_v17 = vld [vmem:[%s562_s1 + $0x48] sm:$0xff]  ;;  %v33_v20 = vld [vmem:[%s562_s1 + $0x58] sm:$0xff] }
   0x6   :  { %355 = vmatprep.subr.bf16.mxu0 %v354_v5  ;;  %v366_v18 = vpack.c.bf16 %v31_v17, %v30_v16  ;;  %v370_v21 = vpack.c.bf16 %v33_v20, %v32_v19  ;;  %v34_v22 = vld [vmem:[%s562_s1 + $0x60] sm:$0xff]  ;;  %v35_v23 = vld [vmem:[%s562_s1 + $0x68] sm:$0xff]  ;;  %v36_v25 = vld [vmem:[%s562_s1 + $0x70] sm:$0xff] }
   0x7   :  { %383 = vmatprep.subr.bf16.mxu1 %v382_v14  ;;  %v374_v24 = vpack.c.bf16 %v35_v23, %v34_v22  ;;  %v37_v26 = vld [vmem:[%s562_s1 + $0x78] sm:$0xff]  ;;  %v21_v28 = vld [vmem:[%s563_s0 + $0x8] sm:$0xff]  ;;  %v140_v29 = vld [vmem:[%s564_s3 + $0x10] sm:$0xff] }
   0x8   :  { %385 = vmatpush3.bf16.msra.mxu1 %v382_v14  ;;  %v378_v27 = vpack.c.bf16 %v37_v26, %v36_v25  ;;  %v141_v30 = vld [vmem:[%s564_s3 + $0x18] sm:$0xff]  ;;  %v142_v32 = vld [vmem:[%s564_s3 + $0x20] sm:$0xff]  ;;  %v143_v33 = vld [vmem:[%s564_s3 + $0x28] sm:$0xff] }
   0x9   :  { %357 = vmatpush3.bf16.msra.mxu0 %v354_v5  ;;  %v386_v31 = vpack.c.bf16 %v141_v30, %v140_v29  ;;  %v390_v34 = vpack.c.bf16 %v143_v33, %v142_v32  ;;  %v144_v35 = vld [vmem:[%s564_s3 + $0x30] sm:$0xff]  ;;  %v145_v36 = vld [vmem:[%s564_s3 + $0x38] sm:$0xff]  ;;  %v146_v38 = vld [vmem:[%s564_s3 + $0x40] sm:$0xff] }
   0xa   :  { %359 = vmatprep.subr.bf16.mxu0 %v358_v8  ;;  %v394_v37 = vpack.c.bf16 %v145_v36, %v144_v35  ;;  %v147_v39 = vld [vmem:[%s564_s3 + $0x48] sm:$0xff]  ;;  %v148_v40 = vld [vmem:[%s564_s3 + $0x50] sm:$0xff]  ;;  %v149_v42 = vld [vmem:[%s564_s3 + $0x58] sm:$0xff] }
   0xb   :  { %387 = vmatprep.subr.bf16.mxu1 %v386_v31  ;;  %v398_v41 = vpack.c.bf16 %v147_v39, %v146_v38  ;;  %v402_v43 = vpack.c.bf16 %v149_v42, %v148_v40  ;;  %v150_v44 = vld [vmem:[%s564_s3 + $0x60] sm:$0xff]  ;;  %v151_v45 = vld [vmem:[%s564_s3 + $0x68] sm:$0xff]  ;;  %v152_v47 = vld [vmem:[%s564_s3 + $0x70] sm:$0xff] }
   0xc   :  { %389 = vmatpush3.bf16.msra.mxu1 %v386_v31  ;;  %v406_v46 = vpack.c.bf16 %v151_v45, %v150_v44  ;;  %v153_v48 = vld [vmem:[%s564_s3 + $0x78] sm:$0xff]  ;;  %v242_v50 = vld [vmem:[%s565_s2] ss:$0 sm:$0xff] }
   0xd   :  { %361 = vmatpush3.bf16.msra.mxu0 %v358_v8  ;;  %391 = vmatprep.subr.bf16.mxu1 %v390_v34  ;;  %v410_v49 = vpack.c.bf16 %v153_v48, %v152_v47  ;;  %v243_v9 = vld [vmem:[%s566_s4] ss:$0 sm:$0xff] }
   0xe   :  { %363 = vmatprep.subr.bf16.mxu0 %v362_v15 }
  0x10   :  { %393 = vmatpush3.bf16.msra.mxu1 %v390_v34 }
  0x11   :  { %365 = vmatpush3.bf16.msra.mxu0 %v362_v15  ;;  %395 = vmatprep.subr.bf16.mxu1 %v394_v37 }
  0x12   :  { %367 = vmatprep.subr.bf16.mxu0 %v366_v18 }
  0x14   :  { %397 = vmatpush3.bf16.msra.mxu1 %v394_v37 }
  0x15   :  { %369 = vmatpush3.bf16.msra.mxu0 %v366_v18  ;;  %399 = vmatprep.subr.bf16.mxu1 %v398_v41 }
  0x16   :  { %371 = vmatprep.subr.bf16.mxu0 %v370_v21 }
  0x18   :  { %401 = vmatpush3.bf16.msra.mxu1 %v398_v41 }
  0x19   :  { %373 = vmatpush3.bf16.msra.mxu0 %v370_v21  ;;  %403 = vmatprep.subr.bf16.mxu1 %v402_v43 }
  0x1a   :  { %375 = vmatprep.subr.bf16.mxu0 %v374_v24 }
  0x1c   :  { %405 = vmatpush3.bf16.msra.mxu1 %v402_v43 }
  0x1d   :  { %377 = vmatpush3.bf16.msra.mxu0 %v374_v24  ;;  %407 = vmatprep.subr.bf16.mxu1 %v406_v46 }
  0x1e   :  { %379 = vmatprep.subr.bf16.mxu0 %v378_v27 }
  0x20   :  { %409 = vmatpush3.bf16.msra.mxu1 %v406_v46 }
  0x21   :  { %381 = vmatpush3.bf16.msra.mxu0 %v378_v27  ;;  %411 = vmatprep.subr.bf16.mxu1 %v410_v49 }
  0x24   :  { %313 = vmatmul.mubr.f32.vlgmr.msra.gmra.mrb[0].mxu0 %v21_v28  ;;  %413 = vmatpush3.bf16.msra.mxu1 %v410_v49 }
  0xf7   :  { %v314_v51 = vpop.f32.mrb[0].mxu0 }
  0xf8   :  { %v117_v52 = vadd.f32 %v314_v51, %v242_v50  ;;  %v111_v53 = vpop.f32.mrb[1].mxu0 }
  0xf9   :  { %v112_v54 = vadd.f32 %v242_v50, %v111_v53 }
  0xfa   :  { %v123_v55 = vmul.f32 %v117_v52, %v117_v52  ;;  %v121_v6 = vmul.f32 0.5, %v117_v52 }
  0xfb   :  { %v122_v56 = vmul.f32 %v112_v54, %v112_v54  ;;  %v120_v4 = vmul.f32 0.5, %v112_v54 }
  0xfc   :  { %v125_v57 = vmul.f32 %v123_v55, %v117_v52 }
  0xfd   :  { %v124_v58 = vmul.f32 %v122_v56, %v112_v54 }
  0xfe   :  { %v127_v59 = vmul.f32 0.044715, %v125_v57 }
  0xff   :  { %v126_v60 = vmul.f32 0.044715, %v124_v58 }
 0x100   :  { %v129_v61 = vadd.f32 %v127_v59, %v117_v52 }
 0x101   :  { %v128_v62 = vadd.f32 %v126_v60, %v112_v54 }
 0x102   :  { %v131_v63 = vmul.f32 0.7978846, %v129_v61 }
 0x103   :  { %v130_v0 = vmul.f32 0.7978846, %v128_v62 }
 0x104   :  { %414 = vtanh.f32 %v131_v63 }
 0x105   :  { %416 = vtanh.f32 %v130_v0 }
 0x10e   :  { %v415_v1 = vpop.eup %414 }
 0x10f   :  { %v417_v2 = vpop.eup %416  ;;  %v135_v3 = vadd.f32 1.0, %v415_v1 }
 0x110   :  { %v134_v5 = vadd.f32 1.0, %v417_v2 }
 0x111   :  { %v137_v8 = vmul.f32 %v135_v3, %v121_v6 }
 0x112   :  { %v136_v7 = vmul.f32 %v134_v5, %v120_v4 }
 0x114   :  { %347 = vmatprep.mubr.f32.mxu1 %v136_v7 }
 0x115   :  { %348 = vmatmul.mubr.f32.vlgmr.msra.gmra.mrb[0].mxu1 %v137_v8 }
 0x1e8   :  { %v349_v10 = vpop.f32.mrb[0].mxu1 }
 0x1e9   :  { %v233_v11 = vadd.f32 %v349_v10, %v243_v9  ;;  %v227_v12 = vpop.f32.mrb[1].mxu1 }
 0x1ea   :  { %v228_v13 = vadd.f32 %v243_v9, %v227_v12 }
 0x1eb   :  { %237 = vst [vmem:[%s567_s5 + $0x8] sm:$0xff] %v233_v11 }
 0x1ec   :  { %236 = vst [vmem:[%s567_s5] sm:$0xff] %v228_v13 }

// kernel: _feed_forward_impl.1
= control target key start
LH: loop header
LB: loop body
LE: loop exit
PB: predicated region body
PF: predicated region fallthrough
CT: control target
= control target key end

     0   :  { %s562_s1 = inlined_call_operand.vmem [shape: f32[128,128], index: 1, kind: input, shape index: {}]   ;;  %s563_s0 = inlined_call_operand.vmem [shape: f32[16,128], index: 0, kind: input, shape index: {}]   ;;  %s564_s3 = inlined_call_operand.vmem [shape: f32[128,128], index: 3, kind: input, shape index: {}]   ;;  %s565_s2 = inlined_call_operand.vmem [shape: f32[1,128], index: 2, kind: input, shape index: {}]   ;;  %s566_s4 = inlined_call_operand.vmem [shape: f32[1,128], index: 4, kind: input, shape index: {}]   ;;  %s567_s5 = inlined_call_operand.vmem [shape: f32[16,128], index: 5, kind: output, shape index: {}]  }
   0x1   :  { %v22_v0 = vld [vmem:[%s562_s1] sm:$0xff]  ;;  %v23_v1 = vld [vmem:[%s562_s1 + $0x8] sm:$0xff]  ;;  %v24_v2 = vld [vmem:[%s562_s1 + $0x10] sm:$0xff] }
   0x2   :  { %v350_v3 = vpack.c.bf16 %v23_v1, %v22_v0  ;;  %v25_v4 = vld [vmem:[%s562_s1 + $0x18] sm:$0xff]  ;;  %v26_v6 = vld [vmem:[%s562_s1 + $0x20] sm:$0xff]  ;;  %v27_v7 = vld [vmem:[%s562_s1 + $0x28] sm:$0xff] }
   0x3   :  { %v354_v5 = vpack.c.bf16 %v25_v4, %v24_v2  ;;  %v358_v8 = vpack.c.bf16 %v27_v7, %v26_v6  ;;  %v28_v9 = vld [vmem:[%s562_s1 + $0x30] sm:$0xff]  ;;  %v20_v10 = vld [vmem:[%s563_s0] sm:$0xff]  ;;  %v29_v11 = vld [vmem:[%s562_s1 + $0x38] sm:$0xff] }
   0x4   :  { %351 = vmatprep.subr.bf16.mxu0 %v350_v3  ;;  %312 = vmatprep.mubr.f32.mxu0 %v20_v10  ;;  %v138_v12 = vld [vmem:[%s564_s3] sm:$0xff]  ;;  %v139_v13 = vld [vmem:[%s564_s3 + $0x8] sm:$0xff]  ;;  %v362_v15 = vpack.c.bf16 %v29_v11, %v28_v9  ;;  %v32_v19 = vld [vmem:[%s562_s1 + $0x50] sm:$0xff] }
   0x5   :  { %353 = vmatpush3.bf16.msra.mxu0 %v350_v3  ;;  %v382_v14 = vpack.c.bf16 %v139_v13, %v138_v12  ;;  %v30_v16 = vld [vmem:[%s562_s1 + $0x40] sm:$0xff]  ;;  %v31_v17 = vld [vmem:[%s562_s1 + $0x48] sm:$0xff]  ;;  %v33_v20 = vld [vmem:[%s562_s1 + $0x58] sm:$0xff] }
   0x6   :  { %355 = vmatprep.subr.bf16.mxu0 %v354_v5  ;;  %v366_v18 = vpack.c.bf16 %v31_v17, %v30_v16  ;;  %v370_v21 = vpack.c.bf16 %v33_v20, %v32_v19  ;;  %v34_v22 = vld [vmem:[%s562_s1 + $0x60] sm:$0xff]  ;;  %v35_v23 = vld [vmem:[%s562_s1 + $0x68] sm:$0xff]  ;;  %v36_v25 = vld [vmem:[%s562_s1 + $0x70] sm:$0xff] }
   0x7   :  { %383 = vmatprep.subr.bf16.mxu1 %v382_v14  ;;  %v374_v24 = vpack.c.bf16 %v35_v23, %v34_v22  ;;  %v37_v26 = vld [vmem:[%s562_s1 + $0x78] sm:$0xff]  ;;  %v21_v28 = vld [vmem:[%s563_s0 + $0x8] sm:$0xff]  ;;  %v140_v29 = vld [vmem:[%s564_s3 + $0x10] sm:$0xff] }
   0x8   :  { %385 = vmatpush3.bf16.msra.mxu1 %v382_v14  ;;  %v378_v27 = vpack.c.bf16 %v37_v26, %v36_v25  ;;  %v141_v30 = vld [vmem:[%s564_s3 + $0x18] sm:$0xff]  ;;  %v142_v32 = vld [vmem:[%s564_s3 + $0x20] sm:$0xff]  ;;  %v143_v33 = vld [vmem:[%s564_s3 + $0x28] sm:$0xff] }
   0x9   :  { %357 = vmatpush3.bf16.msra.mxu0 %v354_v5  ;;  %v386_v31 = vpack.c.bf16 %v141_v30, %v140_v29  ;;  %v390_v34 = vpack.c.bf16 %v143_v33, %v142_v32  ;;  %v144_v35 = vld [vmem:[%s564_s3 + $0x30] sm:$0xff]  ;;  %v145_v36 = vld [vmem:[%s564_s3 + $0x38] sm:$0xff]  ;;  %v146_v38 = vld [vmem:[%s564_s3 + $0x40] sm:$0xff] }
   0xa   :  { %359 = vmatprep.subr.bf16.mxu0 %v358_v8  ;;  %v394_v37 = vpack.c.bf16 %v145_v36, %v144_v35  ;;  %v147_v39 = vld [vmem:[%s564_s3 + $0x48] sm:$0xff]  ;;  %v148_v40 = vld [vmem:[%s564_s3 + $0x50] sm:$0xff]  ;;  %v149_v42 = vld [vmem:[%s564_s3 + $0x58] sm:$0xff] }
   0xb   :  { %387 = vmatprep.subr.bf16.mxu1 %v386_v31  ;;  %v398_v41 = vpack.c.bf16 %v147_v39, %v146_v38  ;;  %v402_v43 = vpack.c.bf16 %v149_v42, %v148_v40  ;;  %v150_v44 = vld [vmem:[%s564_s3 + $0x60] sm:$0xff]  ;;  %v151_v45 = vld [vmem:[%s564_s3 + $0x68] sm:$0xff]  ;;  %v152_v47 = vld [vmem:[%s564_s3 + $0x70] sm:$0xff] }
   0xc   :  { %389 = vmatpush3.bf16.msra.mxu1 %v386_v31  ;;  %v406_v46 = vpack.c.bf16 %v151_v45, %v150_v44  ;;  %v153_v48 = vld [vmem:[%s564_s3 + $0x78] sm:$0xff]  ;;  %v242_v50 = vld [vmem:[%s565_s2] ss:$0 sm:$0xff] }
   0xd   :  { %361 = vmatpush3.bf16.msra.mxu0 %v358_v8  ;;  %391 = vmatprep.subr.bf16.mxu1 %v390_v34  ;;  %v410_v49 = vpack.c.bf16 %v153_v48, %v152_v47  ;;  %v243_v9 = vld [vmem:[%s566_s4] ss:$0 sm:$0xff] }
   0xe   :  { %363 = vmatprep.subr.bf16.mxu0 %v362_v15 }
  0x10   :  { %393 = vmatpush3.bf16.msra.mxu1 %v390_v34 }
  0x11   :  { %365 = vmatpush3.bf16.msra.mxu0 %v362_v15  ;;  %395 = vmatprep.subr.bf16.mxu1 %v394_v37 }
  0x12   :  { %367 = vmatprep.subr.bf16.mxu0 %v366_v18 }
  0x14   :  { %397 = vmatpush3.bf16.msra.mxu1 %v394_v37 }
  0x15   :  { %369 = vmatpush3.bf16.msra.mxu0 %v366_v18  ;;  %399 = vmatprep.subr.bf16.mxu1 %v398_v41 }
  0x16   :  { %371 = vmatprep.subr.bf16.mxu0 %v370_v21 }
  0x18   :  { %401 = vmatpush3.bf16.msra.mxu1 %v398_v41 }
  0x19   :  { %373 = vmatpush3.bf16.msra.mxu0 %v370_v21  ;;  %403 = vmatprep.subr.bf16.mxu1 %v402_v43 }
  0x1a   :  { %375 = vmatprep.subr.bf16.mxu0 %v374_v24 }
  0x1c   :  { %405 = vmatpush3.bf16.msra.mxu1 %v402_v43 }
  0x1d   :  { %377 = vmatpush3.bf16.msra.mxu0 %v374_v24  ;;  %407 = vmatprep.subr.bf16.mxu1 %v406_v46 }
  0x1e   :  { %379 = vmatprep.subr.bf16.mxu0 %v378_v27 }
  0x20   :  { %409 = vmatpush3.bf16.msra.mxu1 %v406_v46 }
  0x21   :  { %381 = vmatpush3.bf16.msra.mxu0 %v378_v27  ;;  %411 = vmatprep.subr.bf16.mxu1 %v410_v49 }
  0x24   :  { %313 = vmatmul.mubr.f32.vlgmr.msra.gmra.mrb[0].mxu0 %v21_v28  ;;  %413 = vmatpush3.bf16.msra.mxu1 %v410_v49 }
  0xf7   :  { %v314_v51 = vpop.f32.mrb[0].mxu0 }
  0xf8   :  { %v117_v52 = vadd.f32 %v314_v51, %v242_v50  ;;  %v111_v53 = vpop.f32.mrb[1].mxu0 }
  0xf9   :  { %v112_v54 = vadd.f32 %v242_v50, %v111_v53 }
  0xfa   :  { %v123_v55 = vmul.f32 %v117_v52, %v117_v52  ;;  %v121_v6 = vmul.f32 0.5, %v117_v52 }
  0xfb   :  { %v122_v56 = vmul.f32 %v112_v54, %v112_v54  ;;  %v120_v4 = vmul.f32 0.5, %v112_v54 }
  0xfc   :  { %v125_v57 = vmul.f32 %v123_v55, %v117_v52 }
  0xfd   :  { %v124_v58 = vmul.f32 %v122_v56, %v112_v54 }
  0xfe   :  { %v127_v59 = vmul.f32 0.044715, %v125_v57 }
  0xff   :  { %v126_v60 = vmul.f32 0.044715, %v124_v58 }
 0x100   :  { %v129_v61 = vadd.f32 %v127_v59, %v117_v52 }
 0x101   :  { %v128_v62 = vadd.f32 %v126_v60, %v112_v54 }
 0x102   :  { %v131_v63 = vmul.f32 0.7978846, %v129_v61 }
 0x103   :  { %v130_v0 = vmul.f32 0.7978846, %v128_v62 }
 0x104   :  { %414 = vtanh.f32 %v131_v63 }
 0x105   :  { %416 = vtanh.f32 %v130_v0 }
 0x10e   :  { %v415_v1 = vpop.eup %414 }
 0x10f   :  { %v417_v2 = vpop.eup %416  ;;  %v135_v3 = vadd.f32 1.0, %v415_v1 }
 0x110   :  { %v134_v5 = vadd.f32 1.0, %v417_v2 }
 0x111   :  { %v137_v8 = vmul.f32 %v135_v3, %v121_v6 }
 0x112   :  { %v136_v7 = vmul.f32 %v134_v5, %v120_v4 }
 0x114   :  { %347 = vmatprep.mubr.f32.mxu1 %v136_v7 }
 0x115   :  { %348 = vmatmul.mubr.f32.vlgmr.msra.gmra.mrb[0].mxu1 %v137_v8 }
 0x1e8   :  { %v349_v10 = vpop.f32.mrb[0].mxu1 }
 0x1e9   :  { %v233_v11 = vadd.f32 %v349_v10, %v243_v9  ;;  %v227_v12 = vpop.f32.mrb[1].mxu1 }
 0x1ea   :  { %v228_v13 = vadd.f32 %v243_v9, %v227_v12 }
 0x1eb   :  { %237 = vst [vmem:[%s567_s5 + $0x8] sm:$0xff] %v233_v11 }
 0x1ec   :  { %236 = vst [vmem:[%s567_s5] sm:$0xff] %v228_v13 }

</bundles_post_ra>
